<compile_context>
chip_gen: v5e
topology: v5e:2x2
jax: 0.10.0
libtpu: 0.0.40
codegen_flags: <defaults>
</compile_context>

<pallas_src>
import jax
import jax.numpy as jnp
from jax import lax
from jax.experimental import pallas as pl
from jax.experimental.pallas import tpu as pltpu

N_USERS = 1000
N_ITEMS = 500
EMB_DIM = 64           # MLP input = 2 * EMB_DIM = 128
D_IN = 2 * EMB_DIM     # 128
H1 = 128
H2 = 64


def _round_up(x, m):
    return (x + m - 1) // m * m


def ncf_mlp_kernel(x_ref, w1_ref, b1_ref, w2_ref, b2_ref, w3_ref, b3_ref, o_ref):
    # x : (tb, 128) pre-gathered concat([user_emb, item_emb])
    # w1: (128, 128)  b1: (1, 128)
    # w2: (128,  64)  b2: (1,  64)
    # w3: (1,   64)   b3: (1,) scalar in SMEM
    # o : (1, tb) lane-dense output row (lane axis = batch)
    x = x_ref[...]

    h1 = jnp.dot(x, w1_ref[...], preferred_element_type=jnp.float32) + b1_ref[...]
    h1 = jnp.maximum(h1, 0.0)                                            # (tb, 128)

    h2 = jnp.dot(h1, w2_ref[...], preferred_element_type=jnp.float32) + b2_ref[...]
    h2 = jnp.maximum(h2, 0.0)                                            # (tb, 64)

    # Final 64 -> 1 layer: contract w3 (1,64) against h2 (tb,64) on their last dims.
    # Produces (1, tb) directly — no explicit transpose of h2.
    o = lax.dot_general(w3_ref[...], h2,
                        dimension_numbers=(((1,), (1,)), ((), ())),
                        preferred_element_type=jnp.float32) + b3_ref[0]
    o_ref[...] = o.astype(o_ref.dtype)                                   # (1, tb)


def _ncf_mlp_pallas(x_pad, w1, b1, w2, b2, w3, b3, *, tb):
    b_pad = x_pad.shape[0]
    grid = (b_pad // tb,)
    return pl.pallas_call(
        ncf_mlp_kernel,
        out_shape=jax.ShapeDtypeStruct((1, b_pad), jnp.float32),
        grid_spec=pltpu.PrefetchScalarGridSpec(
            num_scalar_prefetch=0,
            grid=grid,
            in_specs=[
                pl.BlockSpec((tb, D_IN), lambda i: (i, 0)),            # x stream
                pl.BlockSpec((D_IN, H1), lambda i: (0, 0)),            # w1 (resident)
                pl.BlockSpec((1, H1), lambda i: (0, 0)),               # b1
                pl.BlockSpec((H1, H2), lambda i: (0, 0)),              # w2
                pl.BlockSpec((1, H2), lambda i: (0, 0)),               # b2
                pl.BlockSpec((1, H2), lambda i: (0, 0)),               # w3 (row layout)
                pl.BlockSpec(memory_space=pltpu.MemorySpace.SMEM),     # b3 scalar
            ],
            out_specs=pl.BlockSpec((1, tb), lambda i: (0, i)),         # lane-dense
        ),
        compiler_params=pltpu.CompilerParams(
            dimension_semantics=("parallel",),   # shard batch axis across TCs (v7x)
        ),
    )(x_pad, w1, b1, w2, b2, w3, b3)


def ncf_forward(params, users, items, *, tb=1024):
    """Forward pass == mlp(cat(user_emb(users), item_emb(items))).squeeze()."""
    B = users.shape[0]

    # Embedding gather + concat in plain XLA (tables are tiny; gather is cheap and
    # the resulting x=(B,128) f32 streams through the kernel at ~512B/row).
    u = jnp.take(params["user_emb"], users.astype(jnp.int32), axis=0)   # (B, 64)
    v = jnp.take(params["item_emb"], items.astype(jnp.int32), axis=0)   # (B, 64)
    x = jnp.concatenate([u, v], axis=1).astype(jnp.float32)             # (B, 128)

    # Tile selection: largest multiple-of-128 tile <= tb, but capped so that the
    # grid has >= 2 steps when B allows it (keeps both v7x TensorCores busy).
    tb = min(tb, _round_up(max((B + 1) // 2, 1), 128))
    b_pad = _round_up(B, tb)
    pad = b_pad - B
    x_pad = jnp.pad(x, ((0, pad), (0, 0)))   # padded rows -> bias-only garbage, sliced off

    out = _ncf_mlp_pallas(x_pad,
                          params["w1"], params["b1"],
                          params["w2"], params["b2"],
                          params["w3"], params["b3"], tb=tb)
    return out[0, :B]   # (B,)  == .squeeze() for B > 1


def init_params(key):
    ks = jax.random.split(key, 8)
    # nn.Embedding default init ~ N(0, 1)
    user_emb = jax.random.normal(ks[0], (N_USERS, EMB_DIM), jnp.float32)
    item_emb = jax.random.normal(ks[1], (N_ITEMS, EMB_DIM), jnp.float32)

    def linear(kw, kb, fan_in, fan_out):
        # PyTorch nn.Linear default: U(-1/sqrt(fan_in), 1/sqrt(fan_in))
        bound = 1.0 / float(fan_in) ** 0.5
        w = jax.random.uniform(kw, (fan_in, fan_out), jnp.float32, -bound, bound)
        b = jax.random.uniform(kb, (1, fan_out), jnp.float32, -bound, bound)
        return w, b

    w1, b1 = linear(ks[2], ks[3], D_IN, H1)            # (128,128), (1,128)
    w2, b2 = linear(ks[4], ks[5], H1, H2)              # (128, 64), (1, 64)
    w3c, b3 = linear(ks[6], ks[7], H2, 1)              # (64, 1),  (1, 1)
    w3 = w3c.T                                          # (1, 64) row layout
    b3 = b3.reshape(1)                                  # (1,) scalar for SMEM
    return dict(user_emb=user_emb, item_emb=item_emb,
                w1=w1, b1=b1, w2=w2, b2=b2, w3=w3, b3=b3)


if __name__ == "__main__":
    key = jax.random.PRNGKey(0)
    pkey, ukey, ikey = jax.random.split(key, 3)
    params = init_params(pkey)

    B = 200  # exercises the pad-to-tile path: tb -> 128, grid -> (2,)
    users = jax.random.randint(ukey, (B,), 0, N_USERS, dtype=jnp.int32)
    items = jax.random.randint(ikey, (B,), 0, N_ITEMS, dtype=jnp.int32)

    out = ncf_forward(params, users, items)
    jax.block_until_ready(out)

    # Pure-JAX reference check (matches the PyTorch forward).
    u = jnp.take(params["user_emb"], users, axis=0)
    v = jnp.take(params["item_emb"], items, axis=0)
    x = jnp.concatenate([u, v], axis=1)
    h1 = jnp.maximum(x @ params["w1"] + params["b1"], 0.0)
    h2 = jnp.maximum(h1 @ params["w2"] + params["b2"], 0.0)
    ref = jnp.sum(h2 * params["w3"], axis=-1) + params["b3"][0]

    assert out.shape == (B,)
    assert jnp.allclose(out, ref, atol=1e-3, rtol=1e-3)

    print("KERNEL_OK")
</pallas_src>

<mosaic_0001>
module attributes {stable_mosaic.version = 11 : i64} {
  func.func @ncf_mlp_kernel(%arg0: i32, %arg1: memref<128x128xf32, #tpu.memory_space<vmem>>, %arg2: memref<128x128xf32, #tpu.memory_space<vmem>>, %arg3: memref<1x128xf32, #tpu.memory_space<vmem>>, %arg4: memref<128x64xf32, #tpu.memory_space<vmem>>, %arg5: memref<1x64xf32, #tpu.memory_space<vmem>>, %arg6: memref<1x64xf32, #tpu.memory_space<vmem>>, %arg7: memref<1xf32, #tpu.memory_space<smem>>, %arg8: memref<1x128xf32, #tpu.memory_space<vmem>>) attributes {dimension_semantics = [#tpu.dimension_semantics<parallel>], iteration_bounds = array<i64: 2>, scalar_prefetch = 0 : i64, scratch_operands = 0 : i64, tpu.core_type = #tpu.core_type<tc>, window_params = [{transform_indices = @transform_0, window_bounds = array<i64: 128, 128>}, {pipeline_mode = #tpu.pipeline_mode<synchronous>, transform_indices = @transform_1, window_bounds = array<i64: 128, 128>}, {pipeline_mode = #tpu.pipeline_mode<synchronous>, transform_indices = @transform_2, window_bounds = array<i64: 1, 128>}, {pipeline_mode = #tpu.pipeline_mode<synchronous>, transform_indices = @transform_3, window_bounds = array<i64: 128, 64>}, {pipeline_mode = #tpu.pipeline_mode<synchronous>, transform_indices = @transform_4, window_bounds = array<i64: 1, 64>}, {pipeline_mode = #tpu.pipeline_mode<synchronous>, transform_indices = @transform_5, window_bounds = array<i64: 1, 64>}, {transform_indices = @transform_6, window_bounds = array<i64: 1>}, {transform_indices = @transform_7, window_bounds = array<i64: 1, 128>}]} {
    %c0 = arith.constant 0 : index
    %c0_0 = arith.constant 0 : index
    %0 = vector.load %arg1[%c0, %c0_0] : memref<128x128xf32, #tpu.memory_space<vmem>>, vector<128x128xf32>
    %c0_1 = arith.constant 0 : index
    %c0_2 = arith.constant 0 : index
    %1 = vector.load %arg2[%c0_1, %c0_2] : memref<128x128xf32, #tpu.memory_space<vmem>>, vector<128x128xf32>
    %cst = arith.constant dense<0.000000e+00> : vector<128x128xf32>
    %2 = tpu.matmul %0, %1, %cst {dimension_numbers = #tpu.dot_dimension_numbers<[1], [0], [0], [1], [0, 0, 1, 1], [], []>} : vector<128x128xf32>, vector<128x128xf32>, vector<128x128xf32> -> vector<128x128xf32>
    %c0_3 = arith.constant 0 : index
    %c0_4 = arith.constant 0 : index
    %3 = vector.load %arg3[%c0_3, %c0_4] : memref<1x128xf32, #tpu.memory_space<vmem>>, vector<1x128xf32>
    %4 = vector.broadcast %3 : vector<1x128xf32> to vector<128x128xf32>
    %5 = arith.addf %2, %4 : vector<128x128xf32>
    %cst_5 = arith.constant 0.000000e+00 : f32
    %6 = vector.broadcast %cst_5 : f32 to vector<128x128xf32>
    %7 = arith.maximumf %5, %6 : vector<128x128xf32>
    %c0_6 = arith.constant 0 : index
    %c0_7 = arith.constant 0 : index
    %8 = vector.load %arg4[%c0_6, %c0_7] : memref<128x64xf32, #tpu.memory_space<vmem>>, vector<128x64xf32>
    %cst_8 = arith.constant dense<0.000000e+00> : vector<128x64xf32>
    %9 = tpu.matmul %7, %8, %cst_8 {dimension_numbers = #tpu.dot_dimension_numbers<[1], [0], [0], [1], [0, 0, 1, 1], [], []>} : vector<128x128xf32>, vector<128x64xf32>, vector<128x64xf32> -> vector<128x64xf32>
    %c0_9 = arith.constant 0 : index
    %c0_10 = arith.constant 0 : index
    %10 = vector.load %arg5[%c0_9, %c0_10] : memref<1x64xf32, #tpu.memory_space<vmem>>, vector<1x64xf32>
    %11 = vector.broadcast %10 : vector<1x64xf32> to vector<128x64xf32>
    %12 = arith.addf %9, %11 : vector<128x64xf32>
    %cst_11 = arith.constant 0.000000e+00 : f32
    %13 = vector.broadcast %cst_11 : f32 to vector<128x64xf32>
    %14 = arith.maximumf %12, %13 : vector<128x64xf32>
    %c0_12 = arith.constant 0 : index
    %c0_13 = arith.constant 0 : index
    %15 = vector.load %arg6[%c0_12, %c0_13] : memref<1x64xf32, #tpu.memory_space<vmem>>, vector<1x64xf32>
    %cst_14 = arith.constant dense<0.000000e+00> : vector<1x128xf32>
    %16 = tpu.matmul %15, %14, %cst_14 {dimension_numbers = #tpu.dot_dimension_numbers<[1], [1], [0], [0], [0, 0, 1, 0], [], []>} : vector<1x64xf32>, vector<128x64xf32>, vector<1x128xf32> -> vector<1x128xf32>
    %c0_15 = arith.constant 0 : index
    %17 = memref.load %arg7[%c0_15] : memref<1xf32, #tpu.memory_space<smem>>
    %18 = vector.broadcast %17 : f32 to vector<1x128xf32>
    %19 = arith.addf %16, %18 : vector<1x128xf32>
    %c0_16 = arith.constant 0 : index
    %c0_17 = arith.constant 0 : index
    %20 = vector.load %arg8[%c0_16, %c0_17] : memref<1x128xf32, #tpu.memory_space<vmem>>, vector<1x128xf32>
    tpu.vector_store %arg8[%c0_16, %c0_17], %19 {strides = array<i32>} : memref<1x128xf32, #tpu.memory_space<vmem>>, vector<1x128xf32>,
    return
  }
  func.func @transform_0(%arg0: i32) -> (i32, i32) {
    %c0_i32 = arith.constant 0 : i32
    %c0_i32_0 = arith.constant 0 : i32
    return %arg0, %c0_i32 : i32, i32
  }
  func.func @transform_1(%arg0: i32) -> (i32, i32) {
    %c0_i32 = arith.constant 0 : i32
    %c0_i32_0 = arith.constant 0 : i32
    %c0_i32_1 = arith.constant 0 : i32
    return %c0_i32, %c0_i32_0 : i32, i32
  }
  func.func @transform_2(%arg0: i32) -> (i32, i32) {
    %c0_i32 = arith.constant 0 : i32
    %c0_i32_0 = arith.constant 0 : i32
    %c0_i32_1 = arith.constant 0 : i32
    return %c0_i32, %c0_i32_0 : i32, i32
  }
  func.func @transform_3(%arg0: i32) -> (i32, i32) {
    %c0_i32 = arith.constant 0 : i32
    %c0_i32_0 = arith.constant 0 : i32
    %c0_i32_1 = arith.constant 0 : i32
    return %c0_i32, %c0_i32_0 : i32, i32
  }
  func.func @transform_4(%arg0: i32) -> (i32, i32) {
    %c0_i32 = arith.constant 0 : i32
    %c0_i32_0 = arith.constant 0 : i32
    %c0_i32_1 = arith.constant 0 : i32
    return %c0_i32, %c0_i32_0 : i32, i32
  }
  func.func @transform_5(%arg0: i32) -> (i32, i32) {
    %c0_i32 = arith.constant 0 : i32
    %c0_i32_0 = arith.constant 0 : i32
    %c0_i32_1 = arith.constant 0 : i32
    return %c0_i32, %c0_i32_0 : i32, i32
  }
  func.func @transform_6(%arg0: i32) -> i32 {
    %c0_i32 = arith.constant 0 : i32
    %c0_i32_0 = arith.constant 0 : i32
    return %c0_i32 : i32
  }
  func.func @transform_7(%arg0: i32) -> (i32, i32) {
    %c0_i32 = arith.constant 0 : i32
    %c0_i32_0 = arith.constant 0 : i32
    return %c0_i32, %arg0 : i32, i32
  }
}

</mosaic_0001>

<bundles_post_ra>
// kernel: tpu_custom_call.1
= control target key start
LH: loop header
LB: loop body
LE: loop exit
PB: predicated region body
PF: predicated region fallthrough
CT: control target
= control target key end

     0   :  { %s1178_s0 = inlined_call_operand.hbm [shape: f32[256,128], index: 0, kind: input, shape index: {}]   ;;  %s1179_s1 = inlined_call_operand.vmem [shape: f32[128,128], index: 1, kind: input, shape index: {}]   ;;  %s1180_s2 = inlined_call_operand.vmem [shape: f32[1,128], index: 2, kind: input, shape index: {}]   ;;  %s1181_s3 = inlined_call_operand.vmem [shape: f32[128,64], index: 3, kind: input, shape index: {}]   ;;  %s1182_s4 = inlined_call_operand.vmem [shape: f32[1,64], index: 4, kind: input, shape index: {}]   ;;  %s1183_s5 = inlined_call_operand.vmem [shape: f32[1,64], index: 5, kind: input, shape index: {}]   ;;  %s1184_s6 = inlined_call_operand.<no memory space> [shape: f32[1], index: 6, kind: input, shape index: {}]   ;;  %s1185_s7 = inlined_call_operand.hbm [shape: f32[1,256], index: 7, kind: output, shape index: {}]  }
   0x1   :  { %12 = sst [smem:[#allocation2]] %s1184_s6 }
   0x2   :  { %13 = vsyncpa [#allocation4], 0 }
   0x3   :  { %15 = vsyncpa [#allocation4 + $0x1], 0 }
   0x4   :  { %16 = vsyncpa [#allocation5], 0 }
   0x5   :  { %18 = vsyncpa [#allocation5 + $0x1], 0  ;;  %s910_s26 = smov 0   ;;  %s912_s27 = smov 0  }
   0x6   :  { %s914_s28 = smov 0   ;;  %s916_s29 = smov 0  }
   0x7 LB: > { %s931_s6 = sadd.s32 4294967295, %s863_s29   ;;  %s673_s30 = sadd.s32 4294967294, %s863_s29   ;;  %s863_s29 = sphi %s916_s29, %s1195_s29   ;;  %s859_s28 = sphi %s914_s28, %s1194_s28   ;;  %s855_s27 = sphi %s912_s27, %s1193_s27   ;;  %s851_s26 = sphi %s910_s26, %s1192_s26  }
   0x8   : > { %s935_s8 = sadd.s32 1, %s863_s29   ;;  %s31_s9 = sadd.s32 1, %s859_s28 }
   0x9   : > { %s28_s10 = ssub.s32 %s863_s29, %s935_s8  ;;  %p38_p0 = scmp.ne.s32.totalorder %s859_s28, %s855_s27 }
   0xa   : > { %p29_p1 = scmp.eq.s32.totalorder %s28_s10, 0  ;;  %p39_p2 = scmp.eq.s32.totalorder %s863_s29, 0 }
   0xb   : > { %p44_p3 = scmp.ne.s32.totalorder %s855_s27, %s851_s26  ;;  %p45_p4 = scmp.eq.s32.totalorder %s931_s6, 0 }
   0xc   : > { %s947_s11 = scalar_select %p29_p1, %s859_s28, %s31_s9  }
   0xd   : > { %p949_p5 = por %p39_p2, %p38_p0  ;;  %p953_p6 = por %p45_p4, %p44_p3 }
   0xe   : > { %p194_p7 = scmp.eq.s32.totalorder %s931_s6, 1  ;;  %p200_p8 = scmp.eq.s32.totalorder %s673_s30, 1 }
   0xf   : > { %p729_p10 = scmp.lt.s32.totalorder %s863_s29, 2  ;;  %s238_s16 = sand.u32 1, %s859_s28  }
  0x10   : > { %p960_p11 = por %p194_p7, %p38_p0  ;;  %p964_p12 = por %p200_p8, %p44_p3 }
  0x11   : > { %s700_s17 = sshll.u32 %s863_s29, 7  ;;  %s676_s18 = sshll.u32 %s238_s16, 7 }
  0x12   : > { %s247_s21 = scalar_lea.hbm %s1178_s0, %s700_s17  ;;  %s242_s23 = scalar_lea.vmem [#allocation3], %s676_s18 }
  0x13   : > { %s248_s22 = sshll.u32 %s247_s21, 4  ;;  %s250_s24 = sshll.u32 %s242_s23, 4  ;;  %s249_s22 = int_to_ptr.hbm [resolvable:$true] %s248_s22  ;;  %s251_s24 = int_to_ptr.vmem [resolvable:$true] %s250_s24 }
  0x14   : > { %p975_p13 = pnand %p729_p10, %p949_p5  ;;  %p679_p0 = scmp.ge.s32.totalorder %s863_s29, 1 }
  0x15   : > { %p258_p1 = scmp.lt.s32.totalorder %s863_s29, 3  ;;  %s239_s30 = scalar_lea.sflag [#allocation4], %s238_s16 }
  0x16   : > { %s767_s9 = sshra.s32 %s249_s22, 4  ;;  %p771_p3 = pneg %p975_p13  ;;  %s768_s9 = int_to_ptr.hbm [resolvable:$true] %s767_s9 }
  0x17   : > { %s769_s10 = scalar_lea.hbm %s768_s9, 128  ;;  %s774_s12 = scalar_lea.hbm %s1178_s0, 256 }
  0x18   : > { %p770_p2 = scmp.ne.s32.totalorder %s768_s9, %s769_s10  ;;  %p775_p5 = scmp.lt.s32.totalorder %s768_s9, %s1178_s0 }
  0x19   : > { %p776_p8 = scmp.lt.s32.totalorder %s774_s12, %s769_s10 }
  0x1a   : > { %p772_p4 = pnand %p771_p3, %p770_p2 }
  0x1b   : > { %p777_p10 = por %p776_p8, %p775_p5 }
  0x1c   : > { %p773_p7 = pneg %p772_p4 }
  0x1e   : > { %p778_p9 = pnand %p777_p10, %p773_p7 }
  0x20   : > { %781 = shalt.err (!%p778_p9)
}
  0x21   : > { %s865_s16 = smov 128   ;;  %s866_s21 = smov 8  }
  0x22   : > { %724 = dma.hbm_to_vmem [thread:$0]  (!%p975_p13), %s249_s22, 2048, %s251_s24, %s239_s30, %s865_s16, %s865_s16, %s866_s21  }
  0x23   : > { %p259_p2 = pnand %p679_p0, %p258_p1 }
  0x24   : > { %s996_s23 = sand.u32 (!%p259_p2), 1, %s855_s27  }
  0x25   : > { %262 = sbr.rel (%p259_p2) target bundleno = 655 (0x28f), region = 48  ;;  %s680_s9 = sshll.u32 (!%p259_p2), %s996_s23, 7 }
  0x26   : > { %s265_s10 = scalar_lea.sflag (!%p259_p2), [#allocation4], %s996_s23  ;;  %s1000_s17 = scalar_lea.vmem (!%p259_p2), [#allocation3], %s680_s9 }
  0x2a   : > { %842 = dma.done.wait (%p953_p6), %s265_s10, 2048  }
  0x2b   : > { %844 = vsyncadd (%p953_p6), %s265_s10, 4294965248  ;;  %v331_v0 = vld [vmem:[%s1179_s1 + $0x78] sm:$0xff]  ;;  %v330_v1 = vld [vmem:[%s1179_s1 + $0x70] sm:$0xff]  ;;  %vm521_vm0 = vcmask 523264   ;;  %s519_s18 = sld [smem:[#allocation2]]  ;;  %s603_s20 = scalar_lea.hbm %s1185_s7, %s931_s6 }
  0x2c   : > { %336 = vmatpush.msra.mxu0 %v331_v0  ;;  %701 = vmatpush.msra.mxu3 %v331_v0  ;;  %v329_v2 = vld [vmem:[%s1179_s1 + $0x68] sm:$0xff]  ;;  %v328_v3 = vld [vmem:[%s1179_s1 + $0x60] sm:$0xff]  ;;  %v327_v4 = vld [vmem:[%s1179_s1 + $0x58] sm:$0xff]  ;;  %s298_s13 = scalar_lea.vmem [#allocation6], %s996_s23  ;;  %s607_s21 = sshll.u32 %s603_s20, 4  ;;  %s608_s21 = int_to_ptr.hbm [resolvable:$true] %s607_s21 }
  0x2d   : > { %v326_v5 = vld [vmem:[%s1179_s1 + $0x50] sm:$0xff]  ;;  %v325_v6 = vld [vmem:[%s1179_s1 + $0x48] sm:$0xff]  ;;  %v324_v7 = vld [vmem:[%s1179_s1 + $0x40] sm:$0xff]  ;;  %s605_s16 = sshll.u32 %s298_s13, 4  ;;  %s595_s9 = scalar_lea.sflag [#allocation5], %s996_s23  ;;  %s606_s16 = int_to_ptr.vmem [resolvable:$true] %s605_s16 }
  0x2e   : > { %337 = vmatpush.msra.mxu0 %v330_v1  ;;  %702 = vmatpush.msra.mxu3 %v330_v1  ;;  %v323_v8 = vld [vmem:[%s1179_s1 + $0x38] sm:$0xff]  ;;  %v322_v9 = vld [vmem:[%s1179_s1 + $0x30] sm:$0xff]  ;;  %v321_v10 = vld [vmem:[%s1179_s1 + $0x28] sm:$0xff]  ;;  %s811_s10 = sshra.s32 %s608_s21, 4  ;;  %s817_s6 = scalar_lea.hbm %s1185_s7, 2  ;;  %s812_s10 = int_to_ptr.hbm [resolvable:$true] %s811_s10 }
  0x2f   : > { %v320_v11 = vld [vmem:[%s1179_s1 + $0x20] sm:$0xff]  ;;  %v319_v12 = vld [vmem:[%s1179_s1 + $0x18] sm:$0xff]  ;;  %v318_v13 = vld [vmem:[%s1179_s1 + $0x10] sm:$0xff]  ;;  %s813_s22 = scalar_lea.hbm %s812_s10, 1  ;;  %p818_p0 = scmp.lt.s32.totalorder %s812_s10, %s1185_s7 }
  0x30   : > { %338 = vmatpush.msra.mxu0 %v329_v2  ;;  %703 = vmatpush.msra.mxu3 %v329_v2  ;;  %v317_v14 = vld [vmem:[%s1179_s1 + $0x8] sm:$0xff]  ;;  %v316_v15 = vld [vmem:[%s1179_s1] sm:$0xff]  ;;  %v302_v18 = vld [vmem:[%s1000_s17 + $0x10] sm:$0xff]  ;;  %p814_p6 = scmp.ne.s32.totalorder %s812_s10, %s813_s22  ;;  %p819_p1 = scmp.lt.s32.totalorder %s817_s6, %s813_s22 }
  0x31   : > { %v300_v16 = vld [vmem:[%s1000_s17] sm:$0xff]  ;;  %v301_v17 = vld [vmem:[%s1000_s17 + $0x8] sm:$0xff]  ;;  %v303_v19 = vld [vmem:[%s1000_s17 + $0x18] sm:$0xff] }
  0x32   : > { %339 = vmatpush.msra.mxu0 %v328_v3  ;;  %704 = vmatpush.msra.mxu3 %v328_v3  ;;  %v304_v20 = vld [vmem:[%s1000_s17 + $0x20] sm:$0xff]  ;;  %v305_v21 = vld [vmem:[%s1000_s17 + $0x28] sm:$0xff]  ;;  %v310_v22 = vld [vmem:[%s1000_s17 + $0x50] sm:$0xff]  ;;  %p815_p9 = pnand %p814_p6, %p960_p11  ;;  %p820_p3 = por %p819_p1, %p818_p0 }
  0x33   : > { %v432_v23 = vld [vmem:[%s1181_s3 + $0x78] sm:$0xff]  ;;  %v431_v24 = vld [vmem:[%s1181_s3 + $0x70] sm:$0xff]  ;;  %v430_v25 = vld [vmem:[%s1181_s3 + $0x68] sm:$0xff] }
  0x34   : > { %340 = vmatpush.msra.mxu0 %v327_v4  ;;  %705 = vmatpush.msra.mxu3 %v327_v4  ;;  %v306_v26 = vld [vmem:[%s1000_s17 + $0x30] sm:$0xff]  ;;  %v429_v27 = vld [vmem:[%s1181_s3 + $0x60] sm:$0xff]  ;;  %v311_v28 = vld [vmem:[%s1000_s17 + $0x58] sm:$0xff]  ;;  %p816_p13 = pneg %p815_p9 }
  0x35   : > { %437 = vmatpush.msra.mxu1 %v432_v23  ;;  %v428_v29 = vld [vmem:[%s1181_s3 + $0x58] sm:$0xff]  ;;  %v427_v30 = vld [vmem:[%s1181_s3 + $0x50] sm:$0xff]  ;;  %v426_v31 = vld [vmem:[%s1181_s3 + $0x48] sm:$0xff] }
  0x36   : > { %341 = vmatpush.msra.mxu0 %v326_v5  ;;  %706 = vmatpush.msra.mxu3 %v326_v5  ;;  %v307_v32 = vld [vmem:[%s1000_s17 + $0x38] sm:$0xff]  ;;  %v425_v33 = vld [vmem:[%s1181_s3 + $0x40] sm:$0xff]  ;;  %v423_v36 = vld [vmem:[%s1181_s3 + $0x30] sm:$0xff]  ;;  %p821_p4 = pnand %p820_p3, %p816_p13 }
  0x37   : > { %438 = vmatpush.msra.mxu1 %v431_v24  ;;  %v312_v34 = vld [vmem:[%s1000_s17 + $0x60] sm:$0xff]  ;;  %v424_v35 = vld [vmem:[%s1181_s3 + $0x38] sm:$0xff]  ;;  %v422_v37 = vld [vmem:[%s1181_s3 + $0x28] sm:$0xff] }
  0x38   : > { %342 = vmatpush.msra.mxu0 %v325_v6  ;;  %707 = vmatpush.msra.mxu3 %v325_v6  ;;  %v308_v38 = vld [vmem:[%s1000_s17 + $0x40] sm:$0xff]  ;;  %v313_v40 = vld [vmem:[%s1000_s17 + $0x68] sm:$0xff]  ;;  %v420_v41 = vld [vmem:[%s1181_s3 + $0x18] sm:$0xff] }
  0x39   : > { %439 = vmatpush.msra.mxu1 %v430_v25  ;;  %v421_v39 = vld [vmem:[%s1181_s3 + $0x20] sm:$0xff]  ;;  %v309_v42 = vld [vmem:[%s1000_s17 + $0x48] sm:$0xff]  ;;  %v314_v43 = vld [vmem:[%s1000_s17 + $0x70] sm:$0xff] }
  0x3a   : > { %343 = vmatpush.msra.mxu0 %v324_v7  ;;  %708 = vmatpush.msra.mxu3 %v324_v7  ;;  %v315_v44 = vld [vmem:[%s1000_s17 + $0x78] sm:$0xff]  ;;  %v419_v45 = vld [vmem:[%s1181_s3 + $0x10] sm:$0xff]  ;;  %v418_v46 = vld [vmem:[%s1181_s3 + $0x8] sm:$0xff] }
  0x3b   : > { %440 = vmatpush.msra.mxu1 %v429_v27  ;;  %v417_v47 = vld [vmem:[%s1181_s3] sm:$0xff] }
  0x3c   : > { %344 = vmatpush.msra.mxu0 %v323_v8  ;;  %709 = vmatpush.msra.mxu3 %v323_v8  ;;  %v765_v48 = vld [vmem:[%s1180_s2] ss:$0 sm:$0xff] }
  0x3d   : > { %441 = vmatpush.msra.mxu1 %v428_v29 }
  0x3e   : > { %345 = vmatpush.msra.mxu0 %v322_v9  ;;  %710 = vmatpush.msra.mxu3 %v322_v9 }
  0x3f   : > { %442 = vmatpush.msra.mxu1 %v427_v30 }
  0x40   : > { %346 = vmatpush.msra.mxu0 %v321_v10  ;;  %711 = vmatpush.msra.mxu3 %v321_v10 }
  0x41   : > { %443 = vmatpush.msra.mxu1 %v426_v31 }
  0x42   : > { %347 = vmatpush.msra.mxu0 %v320_v11  ;;  %712 = vmatpush.msra.mxu3 %v320_v11 }
  0x43   : > { %444 = vmatpush.msra.mxu1 %v425_v33 }
  0x44   : > { %348 = vmatpush.msra.mxu0 %v319_v12  ;;  %713 = vmatpush.msra.mxu3 %v319_v12 }
  0x45   : > { %445 = vmatpush.msra.mxu1 %v424_v35 }
  0x46   : > { %349 = vmatpush.msra.mxu0 %v318_v13  ;;  %714 = vmatpush.msra.mxu3 %v318_v13 }
  0x47   : > { %446 = vmatpush.msra.mxu1 %v423_v36 }
  0x48   : > { %350 = vmatpush.msra.mxu0 %v317_v14  ;;  %715 = vmatpush.msra.mxu3 %v317_v14 }
  0x49   : > { %447 = vmatpush.msra.mxu1 %v422_v37 }
  0x4a   : > { %351 = vmatpush.msra.mxu0 %v316_v15  ;;  %716 = vmatpush.msra.mxu3 %v316_v15 }
  0x4b   : > { %352 = vmatmul.f32.vlgmr.msra.gmra.mxu0 %v300_v16  ;;  %382 = vmatmul.f32.vlgmr.msra.gmra.mxu3 %v310_v22 }
  0x4c   : > { %448 = vmatpush.msra.mxu1 %v421_v39 }
  0x4e   : > { %449 = vmatpush.msra.mxu1 %v420_v41 }
  0x50   : > { %450 = vmatpush.msra.mxu1 %v419_v45 }
  0x52   : > { %451 = vmatpush.msra.mxu1 %v418_v46 }
  0x53   : > { %355 = vmatmul.f32.gmra.mxu0 %v301_v17  ;;  %385 = vmatmul.f32.gmra.mxu3 %v311_v28 }
  0x54   : > { %452 = vmatpush.msra.mxu1 %v417_v47 }
  0x5b   : > { %358 = vmatmul.f32.gmra.mxu0 %v302_v18  ;;  %388 = vmatmul.f32.gmra.mxu3 %v312_v34 }
  0x63   : > { %361 = vmatmul.f32.gmra.mxu0 %v303_v19  ;;  %391 = vmatmul.f32.gmra.mxu3 %v313_v40 }
  0x6b   : > { %364 = vmatmul.f32.gmra.mxu0 %v304_v20  ;;  %394 = vmatmul.f32.gmra.mxu3 %v314_v43 }
  0x73   : > { %367 = vmatmul.f32.gmra.mxu0 %v305_v21  ;;  %397 = vmatmul.f32.gmra.mxu3 %v315_v44 }
  0x7b   : > { %370 = vmatmul.f32.gmra.mxu0 %v306_v26 }
  0x83   : > { %373 = vmatmul.f32.gmra.mxu0 %v307_v32 }
  0x8b   : > { %376 = vmatmul.f32.gmra.mxu0 %v308_v38 }
  0x93   : > { %379 = vmatmul.f32.gmra.mxu0 %v309_v42 }
  0xc8   : > { %v353_v49 = vpop.f32.mrf.mxu0 }
  0xc9   : > { %v354_v50 = vadd.f32 %v765_v48, %v353_v49 }
  0xcb   : > { %v401_v51 = vmax.f32 %v354_v50, 0.0 }
  0xcd   : > { %453 = vmatmul.f32.vlgmr.msra.gmra.mxu1 %v401_v51 }
  0xce   : > { %v383_v10 = vpop.f32.mrf.mxu3 }
  0xcf   : > { %v384_v17 = vadd.f32 %v765_v48, %v383_v10 }
  0xd0   : > { %v356_v52 = vpop.f32.mrf.mxu0 }
  0xd1   : > { %v357_v53 = vadd.f32 %v765_v48, %v356_v52  ;;  %v411_v18 = vmax.f32 %v384_v17, 0.0 }
  0xd3   : > { %v402_v54 = vmax.f32 %v357_v53, 0.0 }
  0xd5   : > { %456 = vmatmul.f32.gmra.mxu1 %v402_v54 }
  0xd6   : > { %v386_v15 = vpop.f32.mrf.mxu3 }
  0xd7   : > { %v387_v20 = vadd.f32 %v765_v48, %v386_v15 }
  0xd8   : > { %v359_v55 = vpop.f32.mrf.mxu0 }
  0xd9   : > { %v360_v56 = vadd.f32 %v765_v48, %v359_v55  ;;  %v412_v21 = vmax.f32 %v387_v20, 0.0 }
  0xdb   : > { %v403_v57 = vmax.f32 %v360_v56, 0.0 }
  0xdd   : > { %459 = vmatmul.f32.gmra.mxu1 %v403_v57 }
  0xde   : > { %v389_v19 = vpop.f32.mrf.mxu3 }
  0xdf   : > { %v390_v22 = vadd.f32 %v765_v48, %v389_v19  ;;  %v520_v19 = vstv %s519_s18 }
  0xe0   : > { %v362_v58 = vpop.f32.mrf.mxu0 }
  0xe1   : > { %v363_v59 = vadd.f32 %v765_v48, %v362_v58  ;;  %v413_v24 = vmax.f32 %v390_v22, 0.0 }
  0xe3   : > { %v404_v60 = vmax.f32 %v363_v59, 0.0 }
  0xe5   : > { %462 = vmatmul.f32.gmra.mxu1 %v404_v60 }
  0xe6   : > { %v392_v23 = vpop.f32.mrf.mxu3 }
  0xe7   : > { %v393_v25 = vadd.f32 %v765_v48, %v392_v23 }
  0xe8   : > { %v365_v61 = vpop.f32.mrf.mxu0 }
  0xe9   : > { %v366_v62 = vadd.f32 %v765_v48, %v365_v61  ;;  %v414_v27 = vmax.f32 %v393_v25, 0.0 }
  0xeb   : > { %v405_v63 = vmax.f32 %v366_v62, 0.0 }
  0xed   : > { %465 = vmatmul.f32.gmra.mxu1 %v405_v63 }
  0xee   : > { %v395_v26 = vpop.f32.mrf.mxu3 }
  0xef   : > { %v396_v28 = vadd.f32 %v765_v48, %v395_v26 }
  0xf0   : > { %v368_v0 = vpop.f32.mrf.mxu0 }
  0xf1   : > { %v369_v1 = vadd.f32 %v765_v48, %v368_v0  ;;  %v415_v29 = vmax.f32 %v396_v28, 0.0 }
  0xf3   : > { %v406_v2 = vmax.f32 %v369_v1, 0.0 }
  0xf5   : > { %468 = vmatmul.f32.gmra.mxu1 %v406_v2 }
  0xf6   : > { %v398_v30 = vpop.f32.mrf.mxu3 }
  0xf7   : > { %v399_v31 = vadd.f32 %v765_v48, %v398_v30 }
  0xf8   : > { %v371_v3 = vpop.f32.mrf.mxu0 }
  0xf9   : > { %v372_v4 = vadd.f32 %v765_v48, %v371_v3  ;;  %v416_v32 = vmax.f32 %v399_v31, 0.0 }
  0xfb   : > { %v407_v5 = vmax.f32 %v372_v4, 0.0 }
  0xfd   : > { %471 = vmatmul.f32.gmra.mxu1 %v407_v5 }
 0x100   : > { %v374_v6 = vpop.f32.mrf.mxu0 }
 0x101   : > { %v375_v7 = vadd.f32 %v765_v48, %v374_v6 }
 0x103   : > { %v408_v8 = vmax.f32 %v375_v7, 0.0 }
 0x105   : > { %474 = vmatmul.f32.gmra.mxu1 %v408_v8 }
 0x108   : > { %v377_v9 = vpop.f32.mrf.mxu0 }
 0x109   : > { %v378_v11 = vadd.f32 %v765_v48, %v377_v9 }
 0x10b   : > { %v409_v12 = vmax.f32 %v378_v11, 0.0 }
 0x10d   : > { %477 = vmatmul.f32.gmra.mxu1 %v409_v12 }
 0x110   : > { %v380_v13 = vpop.f32.mrf.mxu0 }
 0x111   : > { %v381_v14 = vadd.f32 %v765_v48, %v380_v13  ;;  %v766_v48 = vld [vmem:[%s1182_s4] ss:$0 sm:$0xff] }
 0x113   : > { %v410_v16 = vmax.f32 %v381_v14, 0.0 }
 0x115   : > { %480 = vmatmul.f32.gmra.mxu1 %v410_v16 }
 0x11d   : > { %483 = vmatmul.f32.gmra.mxu1 %v411_v18  ;;  %v518_v18 = vld [vmem:[%s1183_s5] sm:$0x1] }
 0x125   : > { %486 = vmatmul.f32.gmra.mxu1 %v412_v21 }
 0x12d   : > { %489 = vmatmul.f32.gmra.mxu1 %v413_v24 }
 0x135   : > { %492 = vmatmul.f32.gmra.mxu1 %v414_v27 }
 0x13d   : > { %495 = vmatmul.f32.gmra.mxu1 %v415_v29 }
 0x145   : > { %498 = vmatmul.f32.gmra.mxu1 %v416_v32 }
 0x14a   : > { %v454_v33 = vpop.f32.mrf.mxu1 }
 0x14b   : > { %v455_v15 = vadd.f32 %v766_v48, %v454_v33 }
 0x14d   : > { %v502_v17 = vmax.f32 %v455_v15, 0.0 }
 0x152   : > { %v457_v34 = vpop.f32.mrf.mxu1 }
 0x153   : > { %v458_v13 = vadd.f32 %v766_v48, %v457_v34 }
 0x155   : > { %v503_v16 = vmax.f32 %v458_v13, 0.0 }
 0x15a   : > { %v460_v35 = vpop.f32.mrf.mxu1 }
 0x15b   : > { %v461_v11 = vadd.f32 %v766_v48, %v460_v35 }
 0x15d   : > { %v504_v14 = vmax.f32 %v461_v11, 0.0 }
 0x162   : > { %v463_v36 = vpop.f32.mrf.mxu1 }
 0x163   : > { %v464_v9 = vadd.f32 %v766_v48, %v463_v36 }
 0x165   : > { %v505_v12 = vmax.f32 %v464_v9, 0.0 }
 0x16a   : > { %v466_v37 = vpop.f32.mrf.mxu1 }
 0x16b   : > { %v467_v7 = vadd.f32 %v766_v48, %v466_v37 }
 0x16d   : > { %v506_v10 = vmax.f32 %v467_v7, 0.0 }
 0x172   : > { %v469_v38 = vpop.f32.mrf.mxu1 }
 0x173   : > { %v470_v5 = vadd.f32 %v766_v48, %v469_v38 }
 0x175   : > { %v507_v8 = vmax.f32 %v470_v5, 0.0 }
 0x17a   : > { %v472_v39 = vpop.f32.mrf.mxu1 }
 0x17b   : > { %v473_v3 = vadd.f32 %v766_v48, %v472_v39 }
 0x17d   : > { %v508_v6 = vmax.f32 %v473_v3, 0.0 }
 0x182   : > { %v475_v40 = vpop.f32.mrf.mxu1 }
 0x183   : > { %v476_v1 = vadd.f32 %v766_v48, %v475_v40 }
 0x185   : > { %v509_v4 = vmax.f32 %v476_v1, 0.0 }
 0x18a   : > { %v478_v41 = vpop.f32.mrf.mxu1 }
 0x18b   : > { %v479_v63 = vadd.f32 %v766_v48, %v478_v41 }
 0x18d   : > { %v510_v2 = vmax.f32 %v479_v63, 0.0 }
 0x192   : > { %v481_v42 = vpop.f32.mrf.mxu1 }
 0x193   : > { %v482_v61 = vadd.f32 %v766_v48, %v481_v42 }
 0x195   : > { %v511_v0 = vmax.f32 %v482_v61, 0.0 }
 0x19a   : > { %v484_v43 = vpop.f32.mrf.mxu1 }
 0x19b   : > { %v485_v59 = vadd.f32 %v766_v48, %v484_v43 }
 0x19d   : > { %v512_v62 = vmax.f32 %v485_v59, 0.0 }
 0x1a2   : > { %v487_v44 = vpop.f32.mrf.mxu1 }
 0x1a3   : > { %v488_v57 = vadd.f32 %v766_v48, %v487_v44 }
 0x1a5   : > { %v513_v60 = vmax.f32 %v488_v57, 0.0 }
 0x1aa   : > { %v490_v45 = vpop.f32.mrf.mxu1 }
 0x1ab   : > { %v491_v55 = vadd.f32 %v766_v48, %v490_v45 }
 0x1ad   : > { %v514_v58 = vmax.f32 %v491_v55, 0.0 }
 0x1b2   : > { %v493_v46 = vpop.f32.mrf.mxu1 }
 0x1b3   : > { %v494_v53 = vadd.f32 %v766_v48, %v493_v46 }
 0x1b5   : > { %v515_v56 = vmax.f32 %v494_v53, 0.0 }
 0x1ba   : > { %v496_v47 = vpop.f32.mrf.mxu1 }
 0x1bb   : > { %v497_v51 = vadd.f32 %v766_v48, %v496_v47 }
 0x1bd   : > { %v516_v54 = vmax.f32 %v497_v51, 0.0 }
 0x1c2   : > { %v499_v49 = vpop.f32.mrf.mxu1 }
 0x1c3   : > { %v500_v50 = vadd.f32 %v766_v48, %v499_v49 }
 0x1c5   : > { %v517_v52 = vmax.f32 %v500_v50, 0.0 }
 0x1c7   : > { %681 = vmatpush.xpose.msk.msra.mxu2 %vm521_vm0, %v517_v52 }
 0x1cb   : > { %682 = vmatpush.xpose.msk.msra.mxu2 %vm521_vm0, %v516_v54 }
 0x1cf   : > { %683 = vmatpush.xpose.msk.msra.mxu2 %vm521_vm0, %v515_v56 }
 0x1d3   : > { %684 = vmatpush.xpose.msk.msra.mxu2 %vm521_vm0, %v514_v58 }
 0x1d7   : > { %685 = vmatpush.xpose.msk.msra.mxu2 %vm521_vm0, %v513_v60 }
 0x1db   : > { %686 = vmatpush.xpose.msk.msra.mxu2 %vm521_vm0, %v512_v62 }
 0x1df   : > { %687 = vmatpush.xpose.msk.msra.mxu2 %vm521_vm0, %v511_v0 }
 0x1e3   : > { %688 = vmatpush.xpose.msk.msra.mxu2 %vm521_vm0, %v510_v2 }
 0x1e7   : > { %689 = vmatpush.xpose.msk.msra.mxu2 %vm521_vm0, %v509_v4 }
 0x1eb   : > { %690 = vmatpush.xpose.msk.msra.mxu2 %vm521_vm0, %v508_v6 }
 0x1ef   : > { %691 = vmatpush.xpose.msk.msra.mxu2 %vm521_vm0, %v507_v8 }
 0x1f3   : > { %692 = vmatpush.xpose.msk.msra.mxu2 %vm521_vm0, %v506_v10 }
 0x1f7   : > { %693 = vmatpush.xpose.msk.msra.mxu2 %vm521_vm0, %v505_v12 }
 0x1fb   : > { %694 = vmatpush.xpose.msk.msra.mxu2 %vm521_vm0, %v504_v14 }
 0x1ff   : > { %695 = vmatpush.xpose.msk.msra.mxu2 %vm521_vm0, %v503_v16 }
 0x203   : > { %696 = vmatpush.xpose.msk.msra.mxu2 %vm521_vm0, %v502_v17 }
 0x206   : > { %697 = vmatmul.msk.f32.vlgmr.msra.gmra.mxu2 %vm521_vm0, %v518_v18 }
 0x289   : > { %v590_v20 = vpop.f32.mrf.mxu2 }
 0x28a   : > { %v591_v21 = vadd.f32 %v590_v20, %v520_v19 }
 0x28c   : > { %593 = vst [vmem:[%s298_s13] sm:$0x1] %v591_v21 }
 0x28d   : > { %824 = shalt.err (!%p821_p4)
}
 0x28e   : > { %719 = dma.vmem_to_hbm [thread:$0]  (%p960_p11), %s606_s16, 16, %s608_s21, %s595_s9  }
 0x28f PF: > { %s619_s23 = sand.u32 1, %s851_s26   ;;  %p1191_p7 = scmp.ge.s32.totalorder %s863_s29, 2 }
 0x290   : > { %s620_s18 = scalar_lea.sflag [#allocation5], %s619_s23 }
 0x291   : > { %p726_p5 = pnand %p1191_p7, %p964_p12 }
 0x293   : > { %p727_p8 = pneg %p726_p5 }
 0x295   : > { %846 = dma.done.wait (%p727_p8), %s620_s18, 16  }
 0x296   : > { %848 = vsyncadd (%p727_p8), %s620_s18, 4294967280  ;;  %p21_p10 = scmp.ge.s32.totalorder %s935_s8, 4   ;;  %s1192_s26 = smov %s855_s27 }
 0x297   : > { %s1193_s27 = smov %s859_s28  ;;  %s1194_s28 = smov %s947_s11 }
 0x298   : > { %s1195_s29 = smov %s935_s8  ;;  %23 = sbr.rel (!%p21_p10) target bundleno = 7 (0x7), region = 93 }
 0x29d   :  { %625 = vsyncpa [#allocation4], 1 }
 0x29e   :  { %627 = vsyncpa [#allocation4 + $0x1], 1 }
 0x29f   :  { %628 = vsyncpa [#allocation5], 1 }
 0x2a0   :  { %630 = vsyncpa [#allocation5 + $0x1], 1 }

</bundles_post_ra>
